<compile_context>
chip_gen: v7x
topology: tpu7x:2x2x1
jax: 0.10.0
libtpu: 0.0.40
codegen_flags: <defaults>
</compile_context>

<pallas_src>
import math
import functools

import jax
import jax.numpy as jnp
from jax.experimental import pallas as pl
from jax.experimental.pallas import tpu as pltpu


def _has_bf16_vpu():
    """bf16 VPU/EUP path exists on v6e/v7x; v2-v5 get the f32 epilogue."""
    try:
        kind = jax.devices()[0].device_kind.lower()
    except Exception:
        return False
    return not any(tag in kind for tag in ("v2", "v3", "v4", "v5"))


def _gelu_tanh(x):
    # tanh-approx GELU: ~5 VALU ops + one EUP tanh (EUP is an otherwise idle bundle slot).
    # TODO(synk): swap back to an exact-erf GELU if bit-parity with torch's default nn.GELU()
    # (erf form) is required; with bf16 outputs the ~1e-3 max difference is immaterial.
    c = 0.7978845608028654  # sqrt(2/pi)
    return 0.5 * x * (1.0 + jnp.tanh(c * (x + 0.044715 * x * x * x)))


def conv_ln_gelu_kernel(x_ref, w_ref, g_ref, b_ref, o_ref, *, eps, inv_c, bf16_epilogue):
    """One fused conv(+stride via im2col) -> LayerNorm(C) -> GELU tile.

    x_ref: (1, TT, K)     bf16 im2col patches (K = k * C_in)
    w_ref: (K, C_out)     bf16 folded conv weight
    g_ref: (1, C_out)     f32 LayerNorm gamma
    b_ref: (1, C_out)     f32 LayerNorm beta
    o_ref: (1, TT, C_out) bf16 output
    """
    # Single MXU matmul, bf16 inputs, f32 accumulation.  No reduction grid axis, so the result is
    # consumed directly (no scratch round-trip).
    acc = jnp.dot(x_ref[0], w_ref[...], preferred_element_type=jnp.float32)   # (TT, C) f32

    # LayerNorm over the channel (lane) dim — one-pass moments, f32 statistics.
    mean = jnp.sum(acc, axis=-1, keepdims=True) * inv_c
    ex2 = jnp.sum(acc * acc, axis=-1, keepdims=True) * inv_c
    var = jnp.maximum(ex2 - mean * mean, 0.0)
    xhat = (acc - mean) * jax.lax.rsqrt(var + eps)

    # Affine + GELU epilogue: bf16 where the chip has a bf16 VPU/EUP path, else f32.
    if bf16_epilogue:
        y = (xhat.astype(jnp.bfloat16) * g_ref[...].astype(jnp.bfloat16)
             + b_ref[...].astype(jnp.bfloat16))
    else:
        y = xhat * g_ref[...] + b_ref[...]
    o_ref[0] = _gelu_tanh(y).astype(o_ref.dtype)


def conv_ln_gelu_layer(x, w2, gamma, beta, *, k, stride, tile_t=1024, bf16_epilogue=False):
    """x: (B, T_in, C_in) channels-last bf16.  Returns (B, T_out, C_out) bf16."""
    B, T_in, C_in = x.shape
    K, C_out = w2.shape
    assert K == k * C_in, (K, k, C_in)
    t_out = (T_in - k) // stride + 1

    # im2col: patches[b, t, j*C_in + c] = x[b, t*stride + j, c], only for kept output positions.
    if k == stride:
        # Non-overlapping window: pure reshape, zero extra HBM traffic.
        patches = x[:, : t_out * k, :].reshape(B, t_out, K)
    elif k == 1:
        patches = x[:, : (t_out - 1) * stride + 1 : stride, :]
    else:
        # Overlapping window: wrapper-side strided gather (k/stride duplication).
        # TODO(synk): fuse into the kernel with a halo'd time block + k accumulated matmuls.
        cols = [x[:, j : j + (t_out - 1) * stride + 1 : stride, :] for j in range(k)]
        patches = jnp.concatenate(cols, axis=-1)

    # Output-time tile: full axis if it fits, else a multiple-of-8 tile.  A ragged last block is
    # safe: all ops are per-timestep, padded rows never affect valid outputs.
    tt = t_out if t_out <= tile_t else tile_t
    if B == 1 and t_out > 16 and pl.cdiv(t_out, tt) < 2:
        # v7x has 2 TensorCores sharded over parallel grid axes: keep >= 2 grid steps.
        tt = max(8, ((t_out + 1) // 2 + 7) // 8 * 8)
    grid = (B, pl.cdiv(t_out, tt))

    return pl.pallas_call(
        functools.partial(conv_ln_gelu_kernel, eps=1e-5, inv_c=1.0 / C_out,
                          bf16_epilogue=bf16_epilogue),
        out_shape=jax.ShapeDtypeStruct((B, t_out, C_out), jnp.bfloat16),
        grid=grid,
        in_specs=[
            pl.BlockSpec((1, tt, K), lambda b, t: (b, t, 0)),
            # Constant across the grid; fetched once.  TODO(synk): pipeline_mode=pl.Buffered(1).
            pl.BlockSpec((K, C_out), lambda b, t: (0, 0)),
            pl.BlockSpec((1, C_out), lambda b, t: (0, 0)),
            pl.BlockSpec((1, C_out), lambda b, t: (0, 0)),
        ],
        out_specs=pl.BlockSpec((1, tt, C_out), lambda b, t: (b, t, 0)),
        compiler_params=pltpu.CompilerParams(
            dimension_semantics=("parallel", "parallel"),
            vmem_limit_bytes=32 * 1024 * 1024),
    )(patches, w2, gamma, beta)


def init_params(key, conv_layers, in_d=1):
    """Deterministic parameter init mirroring the PyTorch module (kaiming_normal_, LN affine).

    Conv weights are pre-folded to (k*C_in, C_out) bf16 for the im2col matmul:
        w2[j*C_in + c, co] = W_torch[co, c, j]
    """
    params = []
    for (dim, k, stride) in conv_layers:
        key, wk = jax.random.split(key)
        fan_in = in_d * k
        std = math.sqrt(2.0 / fan_in)  # kaiming_normal_, fan_in, gain=sqrt(2)
        w = jax.random.normal(wk, (dim, in_d, k), jnp.float32) * std   # torch (C_out, C_in, k)
        w2 = jnp.transpose(w, (2, 1, 0)).reshape(k * in_d, dim).astype(jnp.bfloat16)
        gamma = jnp.ones((1, dim), jnp.float32)
        beta = jnp.zeros((1, dim), jnp.float32)
        params.append((w2, gamma, beta))
        in_d = dim
    return params


def conv_feature_extraction(x, params, conv_layers, tile_t=1024):
    """Forward pass. x: (B, T) or (B, C, T) (PyTorch NCL). Returns f32 (B, C_last, T_last).

    No conv bias (module default conv_bias=False); Dropout(p=0.0) is the identity at inference.
    """
    bf16_epi = _has_bf16_vpu()
    if x.ndim == 2:
        x = x[:, None, :]                                   # unsqueeze(1) -> (B, 1, T)
    x = jnp.transpose(x, (0, 2, 1)).astype(jnp.bfloat16)    # NCL -> (B, T, C), bf16 activations
    for (w2, gamma, beta), (dim, k, stride) in zip(params, conv_layers):
        x = conv_ln_gelu_layer(x, w2, gamma, beta, k=k, stride=stride,
                               tile_t=tile_t, bf16_epilogue=bf16_epi)
    return jnp.transpose(x, (0, 2, 1)).astype(jnp.float32)  # back to PyTorch (B, C, T)


def _reference(x, params, conv_layers):
    """Pure-JAX f32 reference (lax conv + LayerNorm + tanh-GELU), PyTorch (B, C, T) layout."""
    if x.ndim == 2:
        x = x[:, None, :]
    h = x.astype(jnp.float32)                                # (B, C, T)
    for (w2, g, b), (dim, k, s) in zip(params, conv_layers):
        c_in = h.shape[1]
        w = jnp.transpose(w2.astype(jnp.float32).reshape(k, c_in, dim), (2, 1, 0))  # (O, I, k)
        y = jax.lax.conv_general_dilated(h, w, window_strides=(s,), padding="VALID",
                                         dimension_numbers=("NCH", "OIH", "NCH"))
        y = jnp.transpose(y, (0, 2, 1))                      # (B, t_out, dim)
        mu = jnp.mean(y, axis=-1, keepdims=True)
        var = jnp.var(y, axis=-1, keepdims=True)
        y = (y - mu) * jax.lax.rsqrt(var + 1e-5) * g.astype(jnp.float32) + b.astype(jnp.float32)
        h = jnp.transpose(_gelu_tanh(y), (0, 2, 1))
    return h


if __name__ == "__main__":
    # Small config consistent with the module: conv_layers = [(dim, k, stride), ...], in_d=1.
    # Includes one overlapping layer (k>stride) and one non-overlapping (k==stride) layer.
    conv_layers = [(32, 3, 2), (64, 2, 2)]
    B, T = 2, 64

    key = jax.random.PRNGKey(0)
    key, xk = jax.random.split(key)
    x = jax.random.normal(xk, (B, T), jnp.float32)   # 2-D input -> unsqueezed to (B, 1, T)

    params = init_params(key, conv_layers, in_d=1)

    fwd = jax.jit(functools.partial(conv_feature_extraction, conv_layers=conv_layers))
    out = jax.block_until_ready(fwd(x, params))

    # Expected shape: T1 = (64-3)//2+1 = 31, T2 = (31-2)//2+1 = 15 -> (2, 64, 15)
    assert out.shape == (B, conv_layers[-1][0], 15), out.shape
    assert bool(jnp.all(jnp.isfinite(out)))

    # bf16-level tolerance against a pure-JAX f32 reference (activations/weights are bf16).
    ref = _reference(x, params, conv_layers)
    err = float(jnp.max(jnp.abs(out - ref)))
    assert err < 0.1, err

    print("KERNEL_OK")
</pallas_src>

<mosaic_0001>
module attributes {stable_mosaic.version = 11 : i64} {
  func.func @conv_ln_gelu_kernel(%arg0: i32, %arg1: i32, %arg2: memref<1x15x64xbf16, #tpu.memory_space<vmem>>, %arg3: memref<64x64xbf16, #tpu.memory_space<vmem>>, %arg4: memref<1x64xf32, #tpu.memory_space<vmem>>, %arg5: memref<1x64xf32, #tpu.memory_space<vmem>>, %arg6: memref<1x15x64xbf16, #tpu.memory_space<vmem>>) attributes {dimension_semantics = [#tpu.dimension_semantics<parallel>, #tpu.dimension_semantics<parallel>], iteration_bounds = array<i64: 2, 1>, scalar_prefetch = 0 : i64, scratch_operands = 0 : i64, tpu.core_type = #tpu.core_type<tc>, window_params = [{transform_indices = @transform_0, window_bounds = array<i64: 1, 15, 64>}, {pipeline_mode = #tpu.pipeline_mode<synchronous>, transform_indices = @transform_1, window_bounds = array<i64: 64, 64>}, {pipeline_mode = #tpu.pipeline_mode<synchronous>, transform_indices = @transform_2, window_bounds = array<i64: 1, 64>}, {pipeline_mode = #tpu.pipeline_mode<synchronous>, transform_indices = @transform_3, window_bounds = array<i64: 1, 64>}, {transform_indices = @transform_4, window_bounds = array<i64: 1, 15, 64>}]} {
    %c0 = arith.constant 0 : index
    %c0_0 = arith.constant 0 : index
    %c0_1 = arith.constant 0 : index
    %0 = vector.load %arg2[%c0, %c0_0, %c0_1] : memref<1x15x64xbf16, #tpu.memory_space<vmem>>, vector<1x15x64xbf16>
    %1 = vector.shape_cast %0 : vector<1x15x64xbf16> to vector<15x64xbf16>
    %c0_2 = arith.constant 0 : index
    %c0_3 = arith.constant 0 : index
    %2 = vector.load %arg3[%c0_2, %c0_3] : memref<64x64xbf16, #tpu.memory_space<vmem>>, vector<64x64xbf16>
    %cst = arith.constant dense<0.000000e+00> : vector<15x64xf32>
    %3 = tpu.matmul %1, %2, %cst {dimension_numbers = #tpu.dot_dimension_numbers<[1], [0], [0], [1], [0, 0, 1, 1], [], []>} : vector<15x64xbf16>, vector<64x64xbf16>, vector<15x64xf32> -> vector<15x64xf32>
    %cst_4 = arith.constant dense<0.000000e+00> : vector<15xf32>
    %4 = vector.multi_reduction <add>, %3, %cst_4 [1] : vector<15x64xf32> to vector<15xf32>
    %5 = vector.shape_cast %4 : vector<15xf32> to vector<15x1xf32>
    %cst_5 = arith.constant 1.562500e-02 : f32
    %6 = vector.broadcast %cst_5 : f32 to vector<15x1xf32>
    %7 = arith.mulf %5, %6 : vector<15x1xf32>
    %8 = arith.mulf %3, %3 : vector<15x64xf32>
    %cst_6 = arith.constant dense<0.000000e+00> : vector<15xf32>
    %9 = vector.multi_reduction <add>, %8, %cst_6 [1] : vector<15x64xf32> to vector<15xf32>
    %10 = vector.shape_cast %9 : vector<15xf32> to vector<15x1xf32>
    %cst_7 = arith.constant 1.562500e-02 : f32
    %11 = vector.broadcast %cst_7 : f32 to vector<15x1xf32>
    %12 = arith.mulf %10, %11 : vector<15x1xf32>
    %13 = arith.mulf %7, %7 : vector<15x1xf32>
    %14 = arith.subf %12, %13 : vector<15x1xf32>
    %cst_8 = arith.constant 0.000000e+00 : f32
    %15 = vector.broadcast %cst_8 : f32 to vector<15x1xf32>
    %16 = arith.maximumf %14, %15 : vector<15x1xf32>
    %17 = vector.broadcast %7 : vector<15x1xf32> to vector<15x64xf32>
    %18 = arith.subf %3, %17 : vector<15x64xf32>
    %cst_9 = arith.constant 9.99999974E-6 : f32
    %19 = vector.broadcast %cst_9 : f32 to vector<15x1xf32>
    %20 = arith.addf %16, %19 : vector<15x1xf32>
    %21 = math.rsqrt %20 : vector<15x1xf32>
    %22 = vector.broadcast %21 : vector<15x1xf32> to vector<15x64xf32>
    %23 = arith.mulf %18, %22 : vector<15x64xf32>
    %24 = arith.truncf %23 : vector<15x64xf32> to vector<15x64xbf16>
    %c0_10 = arith.constant 0 : index
    %c0_11 = arith.constant 0 : index
    %25 = vector.load %arg4[%c0_10, %c0_11] : memref<1x64xf32, #tpu.memory_space<vmem>>, vector<1x64xf32>
    %26 = arith.truncf %25 : vector<1x64xf32> to vector<1x64xbf16>
    %27 = vector.broadcast %26 : vector<1x64xbf16> to vector<15x64xbf16>
    %28 = arith.mulf %24, %27 : vector<15x64xbf16>
    %c0_12 = arith.constant 0 : index
    %c0_13 = arith.constant 0 : index
    %29 = vector.load %arg5[%c0_12, %c0_13] : memref<1x64xf32, #tpu.memory_space<vmem>>, vector<1x64xf32>
    %30 = arith.truncf %29 : vector<1x64xf32> to vector<1x64xbf16>
    %31 = vector.broadcast %30 : vector<1x64xbf16> to vector<15x64xbf16>
    %32 = arith.addf %28, %31 : vector<15x64xbf16>
    %cst_14 = arith.constant 5.000000e-01 : bf16
    %33 = vector.broadcast %cst_14 : bf16 to vector<15x64xbf16>
    %34 = arith.mulf %33, %32 : vector<15x64xbf16>
    %cst_15 = arith.constant 4.467770e-02 : bf16
    %35 = vector.broadcast %cst_15 : bf16 to vector<15x64xbf16>
    %36 = arith.mulf %35, %32 : vector<15x64xbf16>
    %37 = arith.mulf %36, %32 : vector<15x64xbf16>
    %38 = arith.mulf %37, %32 : vector<15x64xbf16>
    %39 = arith.addf %32, %38 : vector<15x64xbf16>
    %cst_16 = arith.constant 7.968750e-01 : bf16
    %40 = vector.broadcast %cst_16 : bf16 to vector<15x64xbf16>
    %41 = arith.mulf %40, %39 : vector<15x64xbf16>
    %42 = math.tanh %41 : vector<15x64xbf16>
    %cst_17 = arith.constant 1.000000e+00 : bf16
    %43 = vector.broadcast %cst_17 : bf16 to vector<15x64xbf16>
    %44 = arith.addf %43, %42 : vector<15x64xbf16>
    %45 = arith.mulf %34, %44 : vector<15x64xbf16>
    %c0_18 = arith.constant 0 : index
    %c0_19 = arith.constant 0 : index
    %c0_20 = arith.constant 0 : index
    %46 = vector.load %arg6[%c0_18, %c0_19, %c0_20] : memref<1x15x64xbf16, #tpu.memory_space<vmem>>, vector<1x15x64xbf16>
    %47 = vector.shape_cast %46 : vector<1x15x64xbf16> to vector<15x64xbf16>
    %48 = vector.shape_cast %45 : vector<15x64xbf16> to vector<1x15x64xbf16>
    tpu.vector_store %arg6[%c0_18, %c0_19, %c0_20], %48 {strides = array<i32>} : memref<1x15x64xbf16, #tpu.memory_space<vmem>>, vector<1x15x64xbf16>,
    return
  }
  func.func @transform_0(%arg0: i32, %arg1: i32) -> (i32, i32, i32) {
    %c0_i32 = arith.constant 0 : i32
    %c0_i32_0 = arith.constant 0 : i32
    return %arg0, %arg1, %c0_i32 : i32, i32, i32
  }
  func.func @transform_1(%arg0: i32, %arg1: i32) -> (i32, i32) {
    %c0_i32 = arith.constant 0 : i32
    %c0_i32_0 = arith.constant 0 : i32
    %c0_i32_1 = arith.constant 0 : i32
    return %c0_i32, %c0_i32_0 : i32, i32
  }
  func.func @transform_2(%arg0: i32, %arg1: i32) -> (i32, i32) {
    %c0_i32 = arith.constant 0 : i32
    %c0_i32_0 = arith.constant 0 : i32
    %c0_i32_1 = arith.constant 0 : i32
    return %c0_i32, %c0_i32_0 : i32, i32
  }
  func.func @transform_3(%arg0: i32, %arg1: i32) -> (i32, i32) {
    %c0_i32 = arith.constant 0 : i32
    %c0_i32_0 = arith.constant 0 : i32
    %c0_i32_1 = arith.constant 0 : i32
    return %c0_i32, %c0_i32_0 : i32, i32
  }
  func.func @transform_4(%arg0: i32, %arg1: i32) -> (i32, i32, i32) {
    %c0_i32 = arith.constant 0 : i32
    %c0_i32_0 = arith.constant 0 : i32
    return %arg0, %arg1, %c0_i32 : i32, i32, i32
  }
}

module attributes {stable_mosaic.version = 11 : i64} {
  func.func @conv_ln_gelu_kernel(%arg0: i32, %arg1: i32, %arg2: memref<1x31x3xbf16, #tpu.memory_space<vmem>>, %arg3: memref<3x32xbf16, #tpu.memory_space<vmem>>, %arg4: memref<1x32xf32, #tpu.memory_space<vmem>>, %arg5: memref<1x32xf32, #tpu.memory_space<vmem>>, %arg6: memref<1x31x32xbf16, #tpu.memory_space<vmem>>) attributes {dimension_semantics = [#tpu.dimension_semantics<parallel>, #tpu.dimension_semantics<parallel>], iteration_bounds = array<i64: 2, 1>, scalar_prefetch = 0 : i64, scratch_operands = 0 : i64, tpu.core_type = #tpu.core_type<tc>, window_params = [{transform_indices = @transform_0, window_bounds = array<i64: 1, 31, 3>}, {pipeline_mode = #tpu.pipeline_mode<synchronous>, transform_indices = @transform_1, window_bounds = array<i64: 3, 32>}, {pipeline_mode = #tpu.pipeline_mode<synchronous>, transform_indices = @transform_2, window_bounds = array<i64: 1, 32>}, {pipeline_mode = #tpu.pipeline_mode<synchronous>, transform_indices = @transform_3, window_bounds = array<i64: 1, 32>}, {transform_indices = @transform_4, window_bounds = array<i64: 1, 31, 32>}]} {
    %c0 = arith.constant 0 : index
    %c0_0 = arith.constant 0 : index
    %c0_1 = arith.constant 0 : index
    %0 = vector.load %arg2[%c0, %c0_0, %c0_1] : memref<1x31x3xbf16, #tpu.memory_space<vmem>>, vector<1x31x3xbf16>
    %1 = vector.shape_cast %0 : vector<1x31x3xbf16> to vector<31x3xbf16>
    %c0_2 = arith.constant 0 : index
    %c0_3 = arith.constant 0 : index
    %2 = vector.load %arg3[%c0_2, %c0_3] : memref<3x32xbf16, #tpu.memory_space<vmem>>, vector<3x32xbf16>
    %cst = arith.constant dense<0.000000e+00> : vector<31x32xf32>
    %3 = tpu.matmul %1, %2, %cst {dimension_numbers = #tpu.dot_dimension_numbers<[1], [0], [0], [1], [0, 0, 1, 1], [], []>} : vector<31x3xbf16>, vector<3x32xbf16>, vector<31x32xf32> -> vector<31x32xf32>
    %cst_4 = arith.constant dense<0.000000e+00> : vector<31xf32>
    %4 = vector.multi_reduction <add>, %3, %cst_4 [1] : vector<31x32xf32> to vector<31xf32>
    %5 = vector.shape_cast %4 : vector<31xf32> to vector<31x1xf32>
    %cst_5 = arith.constant 3.125000e-02 : f32
    %6 = vector.broadcast %cst_5 : f32 to vector<31x1xf32>
    %7 = arith.mulf %5, %6 : vector<31x1xf32>
    %8 = arith.mulf %3, %3 : vector<31x32xf32>
    %cst_6 = arith.constant dense<0.000000e+00> : vector<31xf32>
    %9 = vector.multi_reduction <add>, %8, %cst_6 [1] : vector<31x32xf32> to vector<31xf32>
    %10 = vector.shape_cast %9 : vector<31xf32> to vector<31x1xf32>
    %cst_7 = arith.constant 3.125000e-02 : f32
    %11 = vector.broadcast %cst_7 : f32 to vector<31x1xf32>
    %12 = arith.mulf %10, %11 : vector<31x1xf32>
    %13 = arith.mulf %7, %7 : vector<31x1xf32>
    %14 = arith.subf %12, %13 : vector<31x1xf32>
    %cst_8 = arith.constant 0.000000e+00 : f32
    %15 = vector.broadcast %cst_8 : f32 to vector<31x1xf32>
    %16 = arith.maximumf %14, %15 : vector<31x1xf32>
    %17 = vector.broadcast %7 : vector<31x1xf32> to vector<31x32xf32>
    %18 = arith.subf %3, %17 : vector<31x32xf32>
    %cst_9 = arith.constant 9.99999974E-6 : f32
    %19 = vector.broadcast %cst_9 : f32 to vector<31x1xf32>
    %20 = arith.addf %16, %19 : vector<31x1xf32>
    %21 = math.rsqrt %20 : vector<31x1xf32>
    %22 = vector.broadcast %21 : vector<31x1xf32> to vector<31x32xf32>
    %23 = arith.mulf %18, %22 : vector<31x32xf32>
    %24 = arith.truncf %23 : vector<31x32xf32> to vector<31x32xbf16>
    %c0_10 = arith.constant 0 : index
    %c0_11 = arith.constant 0 : index
    %25 = vector.load %arg4[%c0_10, %c0_11] : memref<1x32xf32, #tpu.memory_space<vmem>>, vector<1x32xf32>
    %26 = arith.truncf %25 : vector<1x32xf32> to vector<1x32xbf16>
    %27 = vector.broadcast %26 : vector<1x32xbf16> to vector<31x32xbf16>
    %28 = arith.mulf %24, %27 : vector<31x32xbf16>
    %c0_12 = arith.constant 0 : index
    %c0_13 = arith.constant 0 : index
    %29 = vector.load %arg5[%c0_12, %c0_13] : memref<1x32xf32, #tpu.memory_space<vmem>>, vector<1x32xf32>
    %30 = arith.truncf %29 : vector<1x32xf32> to vector<1x32xbf16>
    %31 = vector.broadcast %30 : vector<1x32xbf16> to vector<31x32xbf16>
    %32 = arith.addf %28, %31 : vector<31x32xbf16>
    %cst_14 = arith.constant 5.000000e-01 : bf16
    %33 = vector.broadcast %cst_14 : bf16 to vector<31x32xbf16>
    %34 = arith.mulf %33, %32 : vector<31x32xbf16>
    %cst_15 = arith.constant 4.467770e-02 : bf16
    %35 = vector.broadcast %cst_15 : bf16 to vector<31x32xbf16>
    %36 = arith.mulf %35, %32 : vector<31x32xbf16>
    %37 = arith.mulf %36, %32 : vector<31x32xbf16>
    %38 = arith.mulf %37, %32 : vector<31x32xbf16>
    %39 = arith.addf %32, %38 : vector<31x32xbf16>
    %cst_16 = arith.constant 7.968750e-01 : bf16
    %40 = vector.broadcast %cst_16 : bf16 to vector<31x32xbf16>
    %41 = arith.mulf %40, %39 : vector<31x32xbf16>
    %42 = math.tanh %41 : vector<31x32xbf16>
    %cst_17 = arith.constant 1.000000e+00 : bf16
    %43 = vector.broadcast %cst_17 : bf16 to vector<31x32xbf16>
    %44 = arith.addf %43, %42 : vector<31x32xbf16>
    %45 = arith.mulf %34, %44 : vector<31x32xbf16>
    %c0_18 = arith.constant 0 : index
    %c0_19 = arith.constant 0 : index
    %c0_20 = arith.constant 0 : index
    %46 = vector.load %arg6[%c0_18, %c0_19, %c0_20] : memref<1x31x32xbf16, #tpu.memory_space<vmem>>, vector<1x31x32xbf16>
    %47 = vector.shape_cast %46 : vector<1x31x32xbf16> to vector<31x32xbf16>
    %48 = vector.shape_cast %45 : vector<31x32xbf16> to vector<1x31x32xbf16>
    tpu.vector_store %arg6[%c0_18, %c0_19, %c0_20], %48 {strides = array<i32>} : memref<1x31x32xbf16, #tpu.memory_space<vmem>>, vector<1x31x32xbf16>,
    return
  }
  func.func @transform_0(%arg0: i32, %arg1: i32) -> (i32, i32, i32) {
    %c0_i32 = arith.constant 0 : i32
    %c0_i32_0 = arith.constant 0 : i32
    return %arg0, %arg1, %c0_i32 : i32, i32, i32
  }
  func.func @transform_1(%arg0: i32, %arg1: i32) -> (i32, i32) {
    %c0_i32 = arith.constant 0 : i32
    %c0_i32_0 = arith.constant 0 : i32
    %c0_i32_1 = arith.constant 0 : i32
    return %c0_i32, %c0_i32_0 : i32, i32
  }
  func.func @transform_2(%arg0: i32, %arg1: i32) -> (i32, i32) {
    %c0_i32 = arith.constant 0 : i32
    %c0_i32_0 = arith.constant 0 : i32
    %c0_i32_1 = arith.constant 0 : i32
    return %c0_i32, %c0_i32_0 : i32, i32
  }
  func.func @transform_3(%arg0: i32, %arg1: i32) -> (i32, i32) {
    %c0_i32 = arith.constant 0 : i32
    %c0_i32_0 = arith.constant 0 : i32
    %c0_i32_1 = arith.constant 0 : i32
    return %c0_i32, %c0_i32_0 : i32, i32
  }
  func.func @transform_4(%arg0: i32, %arg1: i32) -> (i32, i32, i32) {
    %c0_i32 = arith.constant 0 : i32
    %c0_i32_0 = arith.constant 0 : i32
    return %arg0, %arg1, %c0_i32 : i32, i32, i32
  }
}

</mosaic_0001>

<bundles_post_ra>
// kernel: conv_feature_extraction.2
= control target key start
LH: loop header
LB: loop body
LE: loop exit
PB: predicated region body
PF: predicated region fallthrough
CT: control target
= control target key end

     0   :  { %s658_s15 = smov 0   ;;  %s660_s16 = smov 0   ;;  %s741_s0 = inlined_call_operand.vmem [shape: bf16[2,31,3], index: 0, kind: input, shape index: {}]   ;;  %s742_s1 = inlined_call_operand.vmem [shape: bf16[3,32], index: 1, kind: input, shape index: {}]   ;;  %s743_s2 = inlined_call_operand.vmem [shape: f32[1,32], index: 2, kind: input, shape index: {}]   ;;  %s744_s3 = inlined_call_operand.vmem [shape: f32[1,32], index: 3, kind: input, shape index: {}]   ;;  %s745_s4 = inlined_call_operand.vmem [shape: bf16[2,31,32], index: 4, kind: output, shape index: {}]  }
   0x1   :  { %s662_s17 = smov 0  }
   0x2 LB: > { %s26_s18 = sadd.s32 1, %s626_s16  ;;  %p543_p0 = scmp.ge.s32.totalorder %s630_s17, 1  ;;  %s630_s17 = sphi %s662_s17, %s14_s17   ;;  %s626_s16 = sphi %s660_s16, %s747_s16   ;;  %s622_s15 = sphi %s658_s15, %s746_s15  }
   0x3   : > { %p28_p1 = scmp.ge.s32.totalorder %s26_s18, 2  ;;  %p183_p2 = scmp.lt.s32.totalorder %s630_s17, 3 }
   0x5   : > { %s749_s18 = smov (%p28_p1, %s26_s18), 0  ;;  %p184_p3 = pnand %p543_p0, %p183_p2 }
   0x6   : > { %v246_v0 = vld [vmem:[%s742_s1] sm:$0x3] (!%p184_p3)  ;;  %vm264_vm0 = vcmask (!%p184_p3), 1040384   ;;  %vm265_vm1 = vcmask (!%p184_p3), 1041408   ;;  %p218_p4 = scmp.lt.s32.totalorder (!%p184_p3), %s622_s15, 1  ;;  %v632_v1 = vmov (!%p184_p3), 65535   ;;  %v393_v51 = vlaneseq (!%p184_p3) }
   0x7   : > { %187 = sbr.rel (%p184_p3) target bundleno = 443 (0x1bb), region = 36  ;;  %v266_v2 = vsel (!%p184_p3), %vm264_vm0, 4294967295, %v632_v1  ;;  %vm257_vm2 = vcmask (!%p184_p3), 23552   ;;  %vm320_vm3 = vcmask (!%p184_p3), 261120   ;;  %vm330_vm4 = vcmask (!%p184_p3), 260096  }
   0x8   : > { %v267_v3 = vsel (!%p184_p3), %vm265_vm1, %v266_v2, 0  ;;  %v388_v53 = vld [vmem:[%s743_s2] sm:$0x1] (!%p184_p3)  ;;  %v394_v59 = vshrl.u32 (!%p184_p3), %v393_v51, 7  ;;  %vm442_vm5 = vcmask (!%p184_p3), 257024  }
   0x9   : > { %v269_v4 = vand.u32 (!%p184_p3), %v267_v3, %v246_v0  ;;  %v399_v56 = vld [vmem:[%s744_s3] sm:$0x1] (!%p184_p3)  ;;  %v389_v58 = vpack.c.bf16 (!%p184_p3), %v388_v53, %v388_v53  ;;  %vm447_vm6 = vsmask.f32 (!%p184_p3), 3328 }
   0xa   : > { %v400_v60 = vpack.c.bf16 (!%p184_p3), %v399_v56, %v399_v56  ;;  %v395_v62 = vsub.s32 (!%p184_p3), 0, %v394_v59  ;;  %vm448_vm7 = vmand (!%p184_p3), %vm442_vm5, %vm447_vm6 }
   0xb   : > { %563 = vmatprep.subr.bf16.mxu0 (!%p184_p3), %v269_v4  ;;  %v391_v61 = vpack.i.b16 (!%p184_p3), %v389_v58, %v389_v58 }
   0xc   : > { %564 = vmatpush3.bf16.msra.mxu0 (!%p184_p3), %v269_v4  ;;  %v402_v2 = vpack.i.b16 (!%p184_p3), %v400_v60, %v400_v60 }
   0xe   : > { %s751_s15 = smov (!%p218_p4, %s622_s15), 1 }
   0xf   : > { %s558_s21 = sshll.u32 %s751_s15, 4 }
  0x10   : > { %s225_s24 = scalar_lea.vmem %s741_s0, %s558_s21  ;;  %s235_s5 = scalar_lea.vmem %s745_s4, %s558_s21 }
  0x11   : > { %v594_v5 = vld [vmem:[%s225_s24] sm:$0xff]   ;;  %v595_v6 = vld [vmem:[%s225_s24 + $0x8] sm:$0xff]  }
  0x12   : > { %565 = vmatprep.mubr.msk.bf16.mxu0 %vm257_vm2, %v594_v5  ;;  %v396_v5 = vrot.slane %v391_v61, %v395_v62 }
  0x13   : > { %566 = vmatmul.mubr.msk.bf16.vlgmr.msra.gmra.mrb[0].mxu0 %vm257_vm2, %v595_v6 }
  0xe6   : > { %v687_v7 = vpop.f32.mrb[0].mxu0 }
  0xe7   : > { %v689_v8 = vpop.f32.mrb[1].mxu0  ;;  %v327_v9 = vsel %vm320_vm3, %v687_v7, 0.0  ;;  %v340_v14 = vmul.f32 %v687_v7, %v687_v7 }
  0xe8   : > { %328 = vadd.xlane.f32.xlu0 %v327_v9  ;;  %v693_v10 = vpop.f32.mrb[2].mxu0  ;;  %v321_v11 = vsel %vm320_vm3, %v689_v8, 0.0  ;;  %v338_v18 = vmul.f32 %v689_v8, %v689_v8 }
  0xe9   : > { %322 = vadd.xlane.f32.xlu1 %v321_v11  ;;  %v697_v12 = vpop.f32.mrb[3].mxu0  ;;  %v331_v13 = vsel %vm330_vm4, %v693_v10, 0.0  ;;  %v341_v16 = vmul.f32 %v693_v10, %v693_v10  ;;  %v348_v17 = vsel %vm320_vm3, %v340_v14, 0.0  ;;  %v407_v14 = vrot.slane %v402_v2, %v395_v62 }
  0xea   : > { %v324_v15 = vsel %vm320_vm3, %v697_v12, 0.0  ;;  %v339_v19 = vmul.f32 %v697_v12, %v697_v12  ;;  %v342_v21 = vsel %vm320_vm3, %v338_v18, 0.0 }
  0xeb   : > { %v351_v20 = vsel %vm330_vm4, %v341_v16, 0.0 }
  0xec   : > { %332 = vadd.xlane.f32.xlu0 %v331_v13  ;;  %v345_v22 = vsel %vm320_vm3, %v339_v19, 0.0 }
  0xed   : > { %325 = vadd.xlane.f32.xlu1 %v324_v15 }
  0xf0   : > { %349 = vadd.xlane.f32.xlu0 %v348_v17 }
  0xf1   : > { %352 = vadd.xlane.f32.xlu1 %v351_v20 }
  0xf4   : > { %343 = vadd.xlane.f32.xlu0 %v342_v21 }
  0xf5   : > { %346 = vadd.xlane.f32.xlu1 %v345_v22 }
 0x175   : > { %v329_v23 = vpop.xlane.xlu0 %328 }
 0x176   : > { %v323_v24 = vpop.xlane.xlu1 %322  ;;  %v336_v26 = vmul.f32 0.03125, %v329_v23 }
 0x177   : > { %v334_v31 = vmul.f32 0.03125, %v323_v24 }
 0x178   : > { %v360_v30 = vmul.f32 %v336_v26, %v336_v26  ;;  %v372_v63 = vsub.f32 %v687_v7, %v336_v26 }
 0x179   : > { %v333_v25 = vpop.xlane.xlu0 %332  ;;  %v358_v40 = vmul.f32 %v334_v31, %v334_v31  ;;  %v370_v9 = vsub.f32 %v689_v8, %v334_v31 }
 0x17a   : > { %v326_v27 = vpop.xlane.xlu1 %325  ;;  %v337_v28 = vmul.f32 0.03125, %v333_v25 }
 0x17b   : > { %v335_v35 = vmul.f32 0.03125, %v326_v27 }
 0x17c   : > { %v361_v34 = vmul.f32 %v337_v28, %v337_v28  ;;  %v373_v1 = vsub.f32 %v693_v10, %v337_v28 }
 0x17d   : > { %v350_v29 = vpop.xlane.xlu0 %349  ;;  %v359_v44 = vmul.f32 %v335_v35, %v335_v35  ;;  %v371_v13 = vsub.f32 %v697_v12, %v335_v35  ;;  %v449_v35 = vld [vmem:[%s235_s5 + $0xc] sm:$0xf] }
 0x17e   : > { %v356_v32 = vmul.f32 0.03125, %v350_v29  ;;  %v353_v33 = vpop.xlane.xlu1 %352 }
 0x17f   : > { %v357_v36 = vmul.f32 0.03125, %v353_v33 }
 0x180   : > { %v364_v37 = vsub.f32 %v356_v32, %v360_v30 }
 0x181   : > { %v365_v38 = vsub.f32 %v357_v36, %v361_v34  ;;  %v344_v39 = vpop.xlane.xlu0 %343 }
 0x182   : > { %v368_v41 = vmax.f32 %v364_v37, 0.0  ;;  %v354_v42 = vmul.f32 0.03125, %v344_v39  ;;  %v347_v43 = vpop.xlane.xlu1 %346 }
 0x183   : > { %v369_v45 = vmax.f32 %v365_v38, 0.0  ;;  %v355_v46 = vmul.f32 0.03125, %v347_v43 }
 0x184   : > { %v376_v47 = vadd.f32 1e-05, %v368_v41  ;;  %v362_v48 = vsub.f32 %v354_v42, %v358_v40 }
 0x185   : > { %v377_v49 = vadd.f32 1e-05, %v369_v45  ;;  %v363_v50 = vsub.f32 %v355_v46, %v359_v44 }
 0x186   : > { %596 = vrsqrt.f32 %v376_v47  ;;  %v366_v52 = vmax.f32 %v362_v48, 0.0 }
 0x187   : > { %598 = vrsqrt.f32 %v377_v49  ;;  %v367_v54 = vmax.f32 %v363_v50, 0.0 }
 0x188   : > { %v374_v55 = vadd.f32 1e-05, %v366_v52 }
 0x189   : > { %v375_v57 = vadd.f32 1e-05, %v367_v54 }
 0x18a   : > { %600 = vrsqrt.f32 %v374_v55 }
 0x18b   : > { %602 = vrsqrt.f32 %v375_v57 }
 0x190   : > { %v597_v0 = vpop.eup %596 }
 0x191   : > { %v599_v3 = vpop.eup %598  ;;  %v384_v4 = vmul.f32 %v597_v0, %v372_v63 }
 0x192   : > { %v385_v6 = vmul.f32 %v599_v3, %v373_v1 }
 0x194   : > { %v601_v11 = vpop.eup %600  ;;  %v387_v15 = vpack.c.bf16 %v385_v6, %v384_v4 }
 0x195   : > { %v603_v16 = vpop.eup %602  ;;  %v382_v17 = vmul.f32 %v601_v11, %v370_v9 }
 0x196   : > { %v398_v18 = vmul.bf16 %v396_v5, %v387_v15  ;;  %v383_v19 = vmul.f32 %v603_v16, %v371_v13 }
 0x198   : > { %v409_v7 = vadd.bf16 %v407_v14, %v398_v18  ;;  %v386_v20 = vpack.c.bf16 %v383_v19, %v382_v17 }
 0x19a   : > { %v413_v21 = vmul.bf16 1027030327, %v409_v7  ;;  %v397_v10 = vmul.bf16 %v396_v5, %v386_v20  ;;  %v411_v31 = vmul.bf16 1056980736, %v409_v7 }
 0x19c   : > { %v415_v22 = vmul.bf16 %v413_v21, %v409_v7  ;;  %v408_v23 = vadd.bf16 %v407_v14, %v397_v10 }
 0x19e   : > { %v417_v24 = vmul.bf16 %v415_v22, %v409_v7  ;;  %v412_v25 = vmul.bf16 1027030327, %v408_v23  ;;  %v410_v38 = vmul.bf16 1056980736, %v408_v23 }
 0x1a0   : > { %v419_v26 = vadd.bf16 %v417_v24, %v409_v7  ;;  %v414_v8 = vmul.bf16 %v412_v25, %v408_v23 }
 0x1a2   : > { %v421_v27 = vmul.bf16 1061961548, %v419_v26  ;;  %v416_v28 = vmul.bf16 %v414_v8, %v408_v23 }
 0x1a4   : > { %604 = vtanh.bf16 %v421_v27  ;;  %v418_v12 = vadd.bf16 %v416_v28, %v408_v23 }
 0x1a6   : > { %v420_v29 = vmul.bf16 1061961548, %v418_v12 }
 0x1a8   : > { %606 = vtanh.bf16 %v420_v29 }
 0x1af   : > { %v605_v30 = vpop.eup %604 }
 0x1b0   : > { %v425_v32 = vadd.bf16 1065369472, %v605_v30 }
 0x1b2   : > { %v427_v33 = vmul.bf16 %v425_v32, %v411_v31 }
 0x1b3   : > { %v607_v34 = vpop.eup %606 }
 0x1b4   : > { %v554_v36 = vcombine.low %v427_v33, %v427_v33  ;;  %v555_v37 = vcombine.high %v427_v33, %v427_v33  ;;  %v424_v39 = vadd.bf16 1065369472, %v607_v34 }
 0x1b6   : > { %445 = vst.msk [vmem:[%s235_s5 + $0x8] sm:$0xf] %vm442_vm5, %v554_v36  ;;  %v450_v40 = vsel %vm448_vm7, %v555_v37, %v449_v35  ;;  %v426_v41 = vmul.bf16 %v424_v39, %v410_v38 }
 0x1b7   : > { %451 = vst [vmem:[%s235_s5 + $0xc] sm:$0xf] %v450_v40 }
 0x1b8   : > { %v552_v42 = vcombine.low %v426_v41, %v426_v41  ;;  %v553_v43 = vcombine.high %v426_v41, %v426_v41 }
 0x1ba   : > { %443 = vst.msk [vmem:[%s235_s5] sm:$0xf] %vm442_vm5, %v552_v42  ;;  %444 = vst.msk [vmem:[%s235_s5 + $0x4] sm:$0xf] %vm442_vm5, %v553_v43 }
 0x1bb PF: > { %s14_s17 = sadd.s32 1, %s630_s17   ;;  %s746_s15 = smov %s626_s16 }
 0x1bc   : > { %p11_p5 = scmp.ge.s32.totalorder %s14_s17, 4   ;;  %s747_s16 = smov %s749_s18 }
 0x1be   :  { %13 = sbr.rel (!%p11_p5) target bundleno = 2 (0x2), region = 66 }

// kernel: conv_feature_extraction.3
= control target key start
LH: loop header
LB: loop body
LE: loop exit
PB: predicated region body
PF: predicated region fallthrough
CT: control target
= control target key end

     0   :  { %s617_s15 = smov 0   ;;  %s619_s16 = smov 0   ;;  %s675_s0 = inlined_call_operand.vmem [shape: bf16[2,15,64], index: 0, kind: input, shape index: {}]   ;;  %s676_s1 = inlined_call_operand.vmem [shape: bf16[64,64], index: 1, kind: input, shape index: {}]   ;;  %s677_s2 = inlined_call_operand.vmem [shape: f32[1,64], index: 2, kind: input, shape index: {}]   ;;  %s678_s3 = inlined_call_operand.vmem [shape: f32[1,64], index: 3, kind: input, shape index: {}]   ;;  %s679_s4 = inlined_call_operand.vmem [shape: bf16[2,15,64], index: 4, kind: output, shape index: {}]  }
   0x1   :  { %s621_s17 = smov 0  }
   0x2 LB: > { %s26_s18 = sadd.s32 1, %s584_s16  ;;  %p495_p0 = scmp.ge.s32.totalorder %s588_s17, 1  ;;  %s588_s17 = sphi %s621_s17, %s14_s17   ;;  %s584_s16 = sphi %s619_s16, %s681_s16   ;;  %s580_s15 = sphi %s617_s15, %s680_s15  }
   0x3   : > { %p28_p1 = scmp.ge.s32.totalorder %s26_s18, 2  ;;  %p183_p2 = scmp.lt.s32.totalorder %s588_s17, 3 }
   0x5   : > { %s683_s18 = smov (%p28_p1, %s26_s18), 0  ;;  %p184_p3 = pnand %p495_p0, %p183_p2 }
   0x6   : > { %v555_v0 = vld [vmem:[%s676_s1] sm:$0xff] (!%p184_p3)   ;;  %v590_v1 = vmov (!%p184_p3), 0.0   ;;  %v556_v2 = vld [vmem:[%s676_s1 + $0x8] sm:$0xff] (!%p184_p3)   ;;  %vm591_vm0 = vmmov (!%p184_p3), 0   ;;  %p218_p4 = scmp.lt.s32.totalorder (!%p184_p3), %s580_s15, 1  ;;  %v557_v3 = vld [vmem:[%s676_s1 + $0x10] sm:$0xff] (!%p184_p3)   ;;  %v365_v32 = vlaneseq (!%p184_p3) }
   0x7   : > { %187 = sbr.rel (%p184_p3) target bundleno = 441 (0x1b9), region = 36  ;;  %517 = vmatprep.subr.bf16.mxu0 (!%p184_p3), %v590_v1  ;;  %525 = vmatprep.mubr.msk.bf16.mxu0 (!%p184_p3), %vm591_vm0, %v590_v1  ;;  %v558_v4 = vld [vmem:[%s676_s1 + $0x18] sm:$0xff] (!%p184_p3)   ;;  %vm281_vm1 = vcmask (!%p184_p3), 523264   ;;  %vm329_vm2 = vcmask (!%p184_p3), 522240   ;;  %v360_v33 = vld [vmem:[%s677_s2] sm:$0x1] (!%p184_p3) }
   0x8   : > { %518 = vmatpush3.bf16.msra.mxu0 (!%p184_p3), %v555_v0  ;;  %v370_v34 = vld [vmem:[%s678_s3] sm:$0x1] (!%p184_p3)  ;;  %v361_v35 = vpack.c.bf16 (!%p184_p3), %v360_v33, %v360_v33  ;;  %v366_v36 = vshrl.u32 (!%p184_p3), %v365_v32, 7  ;;  %vm396_vm3 = vcmask (!%p184_p3), 519168   ;;  %vm399_vm4 = vsmask.f32 (!%p184_p3), 3328 }
   0x9   : > { %519 = vmatprep.subr.bf16.mxu0 (!%p184_p3), %v590_v1  ;;  %v371_v37 = vpack.c.bf16 (!%p184_p3), %v370_v34, %v370_v34  ;;  %vm400_vm5 = vmand (!%p184_p3), %vm396_vm3, %vm399_vm4 }
   0xa   : > { %v363_v38 = vpack.i.b16 (!%p184_p3), %v361_v35, %v361_v35  ;;  %v367_v39 = vsub.s32 (!%p184_p3), 0, %v366_v36 }
   0xb   : > { %v373_v43 = vpack.i.b16 (!%p184_p3), %v371_v37, %v371_v37 }
   0xc   : > { %520 = vmatpush3.bf16.msra.mxu0 (!%p184_p3), %v556_v2  ;;  %v368_v46 = vrot.slane (!%p184_p3), %v363_v38, %v367_v39 }
   0xd   : > { %521 = vmatprep.subr.bf16.mxu0 (!%p184_p3), %v590_v1  ;;  %v378_v48 = vrot.slane (!%p184_p3), %v373_v43, %v367_v39 }
   0xe   : > { %s685_s15 = smov (!%p218_p4, %s580_s15), 1 }
   0xf   : > { %s510_s25 = sshll.u32 %s685_s15, 3 }
  0x10   : > { %s225_s28 = scalar_lea.vmem %s675_s0, %s510_s25  ;;  %522 = vmatpush3.bf16.msra.mxu0 %v557_v3  ;;  %s235_s11 = scalar_lea.vmem %s679_s4, %s510_s25 }
  0x11   : > { %523 = vmatprep.subr.bf16.mxu0 %v590_v1  ;;  %v559_v5 = vld [vmem:[%s225_s28] sm:$0xff]  }
  0x12   : > { %v401_v61 = vld [vmem:[%s235_s11 + $0x4] sm:$0xf] }
  0x14   : > { %524 = vmatpush3.bf16.msra.mxu0 %v558_v4 }
  0x17   : > { %526 = vmatmul.mubr.msk.bf16.vlgmr.msra.gmra.mrb[0].mxu0 %vm281_vm1, %v559_v5 }
  0xea   : > { %v319_v6 = vpop.f32.mrb[0].mxu0 }
  0xeb   : > { %v527_v7 = vpop.f32.mrb[1].mxu0  ;;  %v326_v8 = vsel %vm281_vm1, %v319_v6, 0.0  ;;  %v335_v9 = vmul.f32 %v319_v6, %v319_v6 }
  0xec   : > { %327 = vadd.xlane.f32.xlu0 %v326_v8  ;;  %v322_v10 = vpop.f32.mrb[2].mxu0 }
  0xed   : > { %v528_v11 = vpop.f32.mrb[3].mxu0  ;;  %v337_v12 = vsel %vm281_vm1, %v335_v9, 0.0  ;;  %v336_v13 = vmul.f32 %v322_v10, %v322_v10  ;;  %v330_v14 = vsel %vm329_vm2, %v322_v10, 0.0 }
  0xee   : > { %338 = vadd.xlane.f32.xlu1 %v337_v12 }
  0xef   : > { %v340_v15 = vsel %vm329_vm2, %v336_v13, 0.0 }
  0xf0   : > { %331 = vadd.xlane.f32.xlu0 %v330_v14 }
  0xf2   : > { %341 = vadd.xlane.f32.xlu1 %v340_v15 }
 0x179   : > { %v328_v16 = vpop.xlane.xlu0 %327 }
 0x17a   : > { %v333_v17 = vmul.f32 0.015625, %v328_v16 }
 0x17b   : > { %v339_v18 = vpop.xlane.xlu1 %338 }
 0x17c   : > { %v345_v19 = vmul.f32 %v333_v17, %v333_v17  ;;  %v343_v20 = vmul.f32 0.015625, %v339_v18  ;;  %v351_v41 = vsub.f32 %v319_v6, %v333_v17 }
 0x17d   : > { %v332_v21 = vpop.xlane.xlu0 %331 }
 0x17e   : > { %v347_v22 = vsub.f32 %v343_v20, %v345_v19  ;;  %v334_v23 = vmul.f32 0.015625, %v332_v21 }
 0x17f   : > { %v342_v24 = vpop.xlane.xlu1 %341 }
 0x180   : > { %v349_v25 = vmax.f32 %v347_v22, 0.0  ;;  %v346_v26 = vmul.f32 %v334_v23, %v334_v23  ;;  %v344_v27 = vmul.f32 0.015625, %v342_v24  ;;  %v352_v42 = vsub.f32 %v322_v10, %v334_v23 }
 0x182   : > { %v353_v28 = vadd.f32 1e-05, %v349_v25  ;;  %v348_v29 = vsub.f32 %v344_v27, %v346_v26 }
 0x184   : > { %v350_v30 = vmax.f32 %v348_v29, 0.0  ;;  %560 = vrsqrt.f32 %v353_v28 }
 0x186   : > { %v354_v31 = vadd.f32 1e-05, %v350_v30 }
 0x188   : > { %562 = vrsqrt.f32 %v354_v31 }
 0x18e   : > { %v561_v40 = vpop.eup %560 }
 0x18f   : > { %v357_v45 = vmul.f32 %v561_v40, %v351_v41 }
 0x192   : > { %v563_v44 = vpop.eup %562 }
 0x193   : > { %v358_v47 = vmul.f32 %v563_v44, %v352_v42 }
 0x195   : > { %v359_v49 = vpack.c.bf16 %v358_v47, %v357_v45 }
 0x197   : > { %v369_v50 = vmul.bf16 %v368_v46, %v359_v49 }
 0x199   : > { %v379_v51 = vadd.bf16 %v378_v48, %v369_v50 }
 0x19b   : > { %v381_v52 = vmul.bf16 1027030327, %v379_v51  ;;  %v380_v58 = vmul.bf16 1056980736, %v379_v51 }
 0x19d   : > { %v382_v53 = vmul.bf16 %v381_v52, %v379_v51 }
 0x19f   : > { %v383_v54 = vmul.bf16 %v382_v53, %v379_v51 }
 0x1a1   : > { %v384_v55 = vadd.bf16 %v383_v54, %v379_v51 }
 0x1a3   : > { %v385_v56 = vmul.bf16 1061961548, %v384_v55 }
 0x1a5   : > { %564 = vtanh.bf16 %v385_v56 }
 0x1b0   : > { %v565_v57 = vpop.eup %564 }
 0x1b1   : > { %v387_v59 = vadd.bf16 1065369472, %v565_v57 }
 0x1b3   : > { %v388_v60 = vmul.bf16 %v387_v59, %v380_v58 }
 0x1b5   : > { %v506_v62 = vcombine.low %v388_v60, %v388_v60  ;;  %v507_v63 = vcombine.high %v388_v60, %v388_v60 }
 0x1b7   : > { %397 = vst.msk [vmem:[%s235_s11] sm:$0xf] %vm396_vm3, %v506_v62  ;;  %v402_v0 = vsel %vm400_vm5, %v507_v63, %v401_v61 }
 0x1b8   : > { %403 = vst [vmem:[%s235_s11 + $0x4] sm:$0xf] %v402_v0 }
 0x1b9 PF: > { %s14_s17 = sadd.s32 1, %s588_s17   ;;  %s680_s15 = smov %s584_s16 }
 0x1ba   : > { %p11_p5 = scmp.ge.s32.totalorder %s14_s17, 4   ;;  %s681_s16 = smov %s683_s18 }
 0x1bc   :  { %13 = sbr.rel (!%p11_p5) target bundleno = 2 (0x2), region = 66 }

</bundles_post_ra>
